<compile_context>
chip_gen: v5e
topology: v5e:2x2
jax: 0.10.0
libtpu: 0.0.40
codegen_flags: <defaults>
</compile_context>

<pallas_src>
import functools

import jax
import jax.numpy as jnp
from jax.experimental import pallas as pl
from jax.experimental.pallas import tpu as pltpu


def _mlp_softmax_kernel(x_ref, w1_ref, b1_ref, w2_ref, b2_ref, w3_ref, b3_ref,
                        o_ref):
    # --- Linear(Cin -> H) + ReLU (f32 matmul on MXU, f32 accumulate) ---
    h1 = jnp.dot(x_ref[...], w1_ref[...], preferred_element_type=jnp.float32)
    h1 = jnp.maximum(h1 + b1_ref[...], 0.0)
    # Dropout(p=0.5) -> identity (eval mode)

    # --- Linear(H -> 64) + ReLU ---
    h2 = jnp.dot(h1, w2_ref[...], preferred_element_type=jnp.float32)
    h2 = jnp.maximum(h2 + b2_ref[...], 0.0)
    # Dropout(p=0.5) -> identity (eval mode)

    # --- Linear(64 -> Cout) ---
    logits = jnp.dot(h2, w3_ref[...], preferred_element_type=jnp.float32)
    logits = logits + b3_ref[...]

    # --- Softmax(dim=1) over the true (unpadded) class dimension ---
    m = jnp.max(logits, axis=1, keepdims=True)
    e = jnp.exp(logits - m)
    denom = jnp.sum(e, axis=1, keepdims=True)
    o_ref[...] = (e / denom).astype(o_ref.dtype)   # exact divide: rows sum to 1


def _round_up(n, m):
    return ((n + m - 1) // m) * m


def net_forward(x, params, *, max_batch_tile=4096):
    """Fused Pallas forward pass of `Net`.

    x: [B, input_channels] float32
    params: dict with w1 [Cin,H], b1 [1,H], w2 [H,64], b2 [1,64],
            w3 [64,Cout], b3 [1,Cout] (float32)
    returns: [B, output_channels] float32 (rows sum to 1)
    """
    w1, b1 = params["w1"], params["b1"]
    w2, b2 = params["w2"], params["b2"]
    w3, b3 = params["w3"], params["b3"]

    B, c_in = x.shape
    hidden = w1.shape[1]
    mid = w2.shape[1]
    c_out = w3.shape[1]

    # Batch tiling only; feature dims keep their true sizes (full-extent
    # blocks), so x / weights / output carry no lane padding -> minimal HBM
    # traffic for this bandwidth-bound MLP.
    #   * at least 2 tiles once B is big enough so v7x's two TCs both work,
    #   * tile count scales with B so the tile stays <= max_batch_tile,
    #   * batch rounded up only to the next multiple of 8 per tile.
    n_tiles = max(pl.cdiv(B, max_batch_tile), 2 if B >= 64 else 1)
    tb = _round_up(pl.cdiv(B, n_tiles), 8)
    b_p = n_tiles * tb
    xp = x if b_p == B else jnp.pad(x, ((0, b_p - B), (0, 0)))

    def resident(a):
        # Same block every grid step -> stays resident in VMEM.
        return pl.BlockSpec(a.shape, lambda i: (0, 0))

    flops = 2 * b_p * (c_in * hidden + hidden * mid + mid * c_out)
    transcendentals = b_p * c_out  # exp in the softmax
    bytes_accessed = 4 * (b_p * c_in + b_p * c_out
                          + w1.size + w2.size + w3.size
                          + b1.size + b2.size + b3.size)

    out_p = pl.pallas_call(
        _mlp_softmax_kernel,
        out_shape=jax.ShapeDtypeStruct((b_p, c_out), jnp.float32),
        grid=(n_tiles,),
        in_specs=[
            pl.BlockSpec((tb, c_in), lambda i: (i, 0)),
            resident(w1), resident(b1),
            resident(w2), resident(b2),
            resident(w3), resident(b3),
        ],
        out_specs=pl.BlockSpec((tb, c_out), lambda i: (i, 0)),
        compiler_params=pltpu.CompilerParams(
            dimension_semantics=("parallel",),
            vmem_limit_bytes=32 << 20,
        ),
        cost_estimate=pl.CostEstimate(
            flops=flops,
            transcendentals=transcendentals,
            bytes_accessed=bytes_accessed,
        ),
    )(xp, w1, b1, w2, b2, w3, b3)

    return out_p[:B]


def init_params(key, input_channels, hidden_channels, output_channels):
    """Deterministic parameter init (PyTorch-style uniform fan-in bounds)."""
    ks = jax.random.split(key, 6)

    def linear(kw, kb, fan_in, fan_out):
        bound = 1.0 / jnp.sqrt(fan_in)
        w = jax.random.uniform(kw, (fan_in, fan_out), jnp.float32, -bound, bound)
        b = jax.random.uniform(kb, (1, fan_out), jnp.float32, -bound, bound)
        return w, b

    w1, b1 = linear(ks[0], ks[1], input_channels, hidden_channels)
    w2, b2 = linear(ks[2], ks[3], hidden_channels, 64)
    w3, b3 = linear(ks[4], ks[5], 64, output_channels)
    return {"w1": w1, "b1": b1, "w2": w2, "b2": b2, "w3": w3, "b3": b3}


if __name__ == "__main__":
    input_channels, hidden_channels, output_channels = 32, 64, 16
    batch = 8

    key = jax.random.PRNGKey(0)
    k_params, k_x = jax.random.split(key)
    params = init_params(k_params, input_channels, hidden_channels, output_channels)
    x = jax.random.normal(k_x, (batch, input_channels), jnp.float32)

    out = jax.block_until_ready(net_forward(x, params))

    # sanity: shape + softmax rows sum to 1 (exact divide -> tight tolerance)
    assert out.shape == (batch, output_channels)
    assert bool(jnp.all(jnp.abs(jnp.sum(out, axis=1) - 1.0) < 1e-4))

    # cross-check against a pure-JAX f32 reference of the same forward pass
    def ref(x, p):
        h1 = jnp.maximum(jnp.dot(x, p["w1"]) + p["b1"], 0.0)
        h2 = jnp.maximum(jnp.dot(h1, p["w2"]) + p["b2"], 0.0)
        logits = jnp.dot(h2, p["w3"]) + p["b3"]
        return jax.nn.softmax(logits, axis=1)

    assert jnp.allclose(out, ref(x, params), atol=2e-3)

    print("KERNEL_OK")
</pallas_src>

<mosaic_0001>
module attributes {stable_mosaic.version = 11 : i64} {
  func.func @_mlp_softmax_kernel(%arg0: i32, %arg1: memref<8x32xf32, #tpu.memory_space<vmem>>, %arg2: memref<32x64xf32, #tpu.memory_space<vmem>>, %arg3: memref<1x64xf32, #tpu.memory_space<vmem>>, %arg4: memref<64x64xf32, #tpu.memory_space<vmem>>, %arg5: memref<1x64xf32, #tpu.memory_space<vmem>>, %arg6: memref<64x16xf32, #tpu.memory_space<vmem>>, %arg7: memref<1x16xf32, #tpu.memory_space<vmem>>, %arg8: memref<8x16xf32, #tpu.memory_space<vmem>>) attributes {dimension_semantics = [#tpu.dimension_semantics<parallel>], iteration_bounds = array<i64: 1>, scalar_prefetch = 0 : i64, scratch_operands = 0 : i64, tpu.core_type = #tpu.core_type<tc>, window_params = [{transform_indices = @transform_0, window_bounds = array<i64: 8, 32>}, {pipeline_mode = #tpu.pipeline_mode<synchronous>, transform_indices = @transform_1, window_bounds = array<i64: 32, 64>}, {pipeline_mode = #tpu.pipeline_mode<synchronous>, transform_indices = @transform_2, window_bounds = array<i64: 1, 64>}, {pipeline_mode = #tpu.pipeline_mode<synchronous>, transform_indices = @transform_3, window_bounds = array<i64: 64, 64>}, {pipeline_mode = #tpu.pipeline_mode<synchronous>, transform_indices = @transform_4, window_bounds = array<i64: 1, 64>}, {pipeline_mode = #tpu.pipeline_mode<synchronous>, transform_indices = @transform_5, window_bounds = array<i64: 64, 16>}, {pipeline_mode = #tpu.pipeline_mode<synchronous>, transform_indices = @transform_6, window_bounds = array<i64: 1, 16>}, {transform_indices = @transform_7, window_bounds = array<i64: 8, 16>}]} {
    %c0 = arith.constant 0 : index
    %c0_0 = arith.constant 0 : index
    %0 = vector.load %arg1[%c0, %c0_0] : memref<8x32xf32, #tpu.memory_space<vmem>>, vector<8x32xf32>
    %c0_1 = arith.constant 0 : index
    %c0_2 = arith.constant 0 : index
    %1 = vector.load %arg2[%c0_1, %c0_2] : memref<32x64xf32, #tpu.memory_space<vmem>>, vector<32x64xf32>
    %cst = arith.constant dense<0.000000e+00> : vector<8x64xf32>
    %2 = tpu.matmul %0, %1, %cst {dimension_numbers = #tpu.dot_dimension_numbers<[1], [0], [0], [1], [0, 0, 1, 1], [], []>} : vector<8x32xf32>, vector<32x64xf32>, vector<8x64xf32> -> vector<8x64xf32>
    %c0_3 = arith.constant 0 : index
    %c0_4 = arith.constant 0 : index
    %3 = vector.load %arg3[%c0_3, %c0_4] : memref<1x64xf32, #tpu.memory_space<vmem>>, vector<1x64xf32>
    %4 = vector.broadcast %3 : vector<1x64xf32> to vector<8x64xf32>
    %5 = arith.addf %2, %4 : vector<8x64xf32>
    %cst_5 = arith.constant 0.000000e+00 : f32
    %6 = vector.broadcast %cst_5 : f32 to vector<8x64xf32>
    %7 = arith.maximumf %5, %6 : vector<8x64xf32>
    %c0_6 = arith.constant 0 : index
    %c0_7 = arith.constant 0 : index
    %8 = vector.load %arg4[%c0_6, %c0_7] : memref<64x64xf32, #tpu.memory_space<vmem>>, vector<64x64xf32>
    %cst_8 = arith.constant dense<0.000000e+00> : vector<8x64xf32>
    %9 = tpu.matmul %7, %8, %cst_8 {dimension_numbers = #tpu.dot_dimension_numbers<[1], [0], [0], [1], [0, 0, 1, 1], [], []>} : vector<8x64xf32>, vector<64x64xf32>, vector<8x64xf32> -> vector<8x64xf32>
    %c0_9 = arith.constant 0 : index
    %c0_10 = arith.constant 0 : index
    %10 = vector.load %arg5[%c0_9, %c0_10] : memref<1x64xf32, #tpu.memory_space<vmem>>, vector<1x64xf32>
    %11 = vector.broadcast %10 : vector<1x64xf32> to vector<8x64xf32>
    %12 = arith.addf %9, %11 : vector<8x64xf32>
    %cst_11 = arith.constant 0.000000e+00 : f32
    %13 = vector.broadcast %cst_11 : f32 to vector<8x64xf32>
    %14 = arith.maximumf %12, %13 : vector<8x64xf32>
    %c0_12 = arith.constant 0 : index
    %c0_13 = arith.constant 0 : index
    %15 = vector.load %arg6[%c0_12, %c0_13] : memref<64x16xf32, #tpu.memory_space<vmem>>, vector<64x16xf32>
    %cst_14 = arith.constant dense<0.000000e+00> : vector<8x16xf32>
    %16 = tpu.matmul %14, %15, %cst_14 {dimension_numbers = #tpu.dot_dimension_numbers<[1], [0], [0], [1], [0, 0, 1, 1], [], []>} : vector<8x64xf32>, vector<64x16xf32>, vector<8x16xf32> -> vector<8x16xf32>
    %c0_15 = arith.constant 0 : index
    %c0_16 = arith.constant 0 : index
    %17 = vector.load %arg7[%c0_15, %c0_16] : memref<1x16xf32, #tpu.memory_space<vmem>>, vector<1x16xf32>
    %18 = vector.broadcast %17 : vector<1x16xf32> to vector<8x16xf32>
    %19 = arith.addf %16, %18 : vector<8x16xf32>
    %cst_17 = arith.constant dense<0xFF800000> : vector<8xf32>
    %20 = vector.multi_reduction <maximumf>, %19, %cst_17 [1] : vector<8x16xf32> to vector<8xf32>
    %21 = vector.shape_cast %20 : vector<8xf32> to vector<8x1xf32>
    %22 = vector.broadcast %21 : vector<8x1xf32> to vector<8x16xf32>
    %23 = arith.subf %19, %22 : vector<8x16xf32>
    %24 = math.exp %23 : vector<8x16xf32>
    %cst_18 = arith.constant dense<0.000000e+00> : vector<8xf32>
    %25 = vector.multi_reduction <add>, %24, %cst_18 [1] : vector<8x16xf32> to vector<8xf32>
    %26 = vector.shape_cast %25 : vector<8xf32> to vector<8x1xf32>
    %27 = vector.broadcast %26 : vector<8x1xf32> to vector<8x16xf32>
    %28 = arith.divf %24, %27 : vector<8x16xf32>
    %c0_19 = arith.constant 0 : index
    %c0_20 = arith.constant 0 : index
    %29 = vector.load %arg8[%c0_19, %c0_20] : memref<8x16xf32, #tpu.memory_space<vmem>>, vector<8x16xf32>
    tpu.vector_store %arg8[%c0_19, %c0_20], %28 {strides = array<i32>} : memref<8x16xf32, #tpu.memory_space<vmem>>, vector<8x16xf32>,
    return
  }
  func.func @transform_0(%arg0: i32) -> (i32, i32) {
    %c0_i32 = arith.constant 0 : i32
    %c0_i32_0 = arith.constant 0 : i32
    return %arg0, %c0_i32 : i32, i32
  }
  func.func @transform_1(%arg0: i32) -> (i32, i32) {
    %c0_i32 = arith.constant 0 : i32
    %c0_i32_0 = arith.constant 0 : i32
    %c0_i32_1 = arith.constant 0 : i32
    return %c0_i32, %c0_i32_0 : i32, i32
  }
  func.func @transform_2(%arg0: i32) -> (i32, i32) {
    %c0_i32 = arith.constant 0 : i32
    %c0_i32_0 = arith.constant 0 : i32
    %c0_i32_1 = arith.constant 0 : i32
    return %c0_i32, %c0_i32_0 : i32, i32
  }
  func.func @transform_3(%arg0: i32) -> (i32, i32) {
    %c0_i32 = arith.constant 0 : i32
    %c0_i32_0 = arith.constant 0 : i32
    %c0_i32_1 = arith.constant 0 : i32
    return %c0_i32, %c0_i32_0 : i32, i32
  }
  func.func @transform_4(%arg0: i32) -> (i32, i32) {
    %c0_i32 = arith.constant 0 : i32
    %c0_i32_0 = arith.constant 0 : i32
    %c0_i32_1 = arith.constant 0 : i32
    return %c0_i32, %c0_i32_0 : i32, i32
  }
  func.func @transform_5(%arg0: i32) -> (i32, i32) {
    %c0_i32 = arith.constant 0 : i32
    %c0_i32_0 = arith.constant 0 : i32
    %c0_i32_1 = arith.constant 0 : i32
    return %c0_i32, %c0_i32_0 : i32, i32
  }
  func.func @transform_6(%arg0: i32) -> (i32, i32) {
    %c0_i32 = arith.constant 0 : i32
    %c0_i32_0 = arith.constant 0 : i32
    %c0_i32_1 = arith.constant 0 : i32
    return %c0_i32, %c0_i32_0 : i32, i32
  }
  func.func @transform_7(%arg0: i32) -> (i32, i32) {
    %c0_i32 = arith.constant 0 : i32
    %c0_i32_0 = arith.constant 0 : i32
    return %arg0, %c0_i32 : i32, i32
  }
}

</mosaic_0001>

<bundles_post_ra>
// kernel: tpu_custom_call.1
= control target key start
LH: loop header
LB: loop body
LE: loop exit
PB: predicated region body
PF: predicated region fallthrough
CT: control target
= control target key end

     0   :  { %12 = vsyncpa [#allocation3], 0  ;;  %s371_s0 = inlined_call_operand.vmem [shape: f32[8,32], index: 0, kind: input, shape index: {}]   ;;  %s372_s1 = inlined_call_operand.hbm [shape: f32[32,64], index: 1, kind: input, shape index: {}]   ;;  %s373_s2 = inlined_call_operand.vmem [shape: f32[1,64], index: 2, kind: input, shape index: {}]   ;;  %s374_s3 = inlined_call_operand.vmem [shape: f32[64,64], index: 3, kind: input, shape index: {}]   ;;  %s375_s4 = inlined_call_operand.vmem [shape: f32[1,64], index: 4, kind: input, shape index: {}]   ;;  %s376_s5 = inlined_call_operand.vmem [shape: f32[64,16], index: 5, kind: input, shape index: {}]   ;;  %s377_s6 = inlined_call_operand.vmem [shape: f32[1,16], index: 6, kind: input, shape index: {}]   ;;  %s378_s7 = inlined_call_operand.hbm [shape: f32[8,16], index: 7, kind: output, shape index: {}]  }
   0x1   :  { %13 = vsyncpa [#allocation4], 0  ;;  %s20_s26 = sshll.u32 %s372_s1, 4  ;;  %s258_s27 = smov [#allocation2]   ;;  %s21_s26 = int_to_ptr.hbm [resolvable:$true] %s20_s26 }
   0x2   :  { %s22_s28 = sshll.u32 %s258_s27, 4  ;;  %s259_s29 = smov 128   ;;  %s23_s28 = int_to_ptr.vmem [resolvable:$true] %s22_s28 }
   0x3   :  { %s260_s30 = smov 8  }
   0x4   :  { %28 = dma.hbm_to_vmem [thread:$0]  %s21_s26, 512, %s23_s28, [#allocation3], %s259_s29, %s259_s29, %s260_s30  }
   0x5   :  { %254 = dma.done.wait [#allocation3], 512  }
   0x6   :  { %255 = vsyncadd [#allocation3], 4294966784  ;;  %v47_v0 = vld [vmem:[#allocation2 + $0x18] sm:$0xff]  ;;  %v46_v1 = vld [vmem:[#allocation2 + $0x10] sm:$0xff]  ;;  %vm52_vm0 = vcmask 261120   ;;  %vm89_vm1 = vcmask 523264  }
   0x7   :  { %68 = vmatpush.msra.mxu0 %v47_v0  ;;  %v84_v2 = vld [vmem:[%s374_s3 + $0x38] sm:$0xff]  ;;  %v45_v3 = vld [vmem:[#allocation2 + $0x8] sm:$0xff]  ;;  %v83_v4 = vld [vmem:[%s374_s3 + $0x30] sm:$0xff]  ;;  %vm149_vm2 = vcmask 130048  }
   0x8   :  { %101 = vmatpush.msra.mxu1 %v84_v2  ;;  %v82_v5 = vld [vmem:[%s374_s3 + $0x28] sm:$0xff]  ;;  %v44_v6 = vld [vmem:[#allocation2] sm:$0xff]  ;;  %v80_v9 = vld [vmem:[%s374_s3 + $0x18] sm:$0xff] }
   0x9   :  { %69 = vmatpush.msra.mxu0 %v46_v1  ;;  %v43_v7 = vld [vmem:[%s371_s0] sm:$0xff]  ;;  %v79_v10 = vld [vmem:[%s374_s3 + $0x10] sm:$0xff]  ;;  %v78_v11 = vld [vmem:[%s374_s3 + $0x8] sm:$0xff]  ;;  %s182_s0 = sshll.u32 %s378_s7, 4  ;;  %s183_s0 = int_to_ptr.hbm [resolvable:$true] %s182_s0 }
   0xa   :  { %102 = vmatpush.msra.mxu1 %v83_v4  ;;  %v81_v8 = vld [vmem:[%s374_s3 + $0x20] sm:$0xff]  ;;  %v121_v13 = vld [vmem:[%s376_s5 + $0x38] sm:$0xff]  ;;  %v120_v14 = vld [vmem:[%s376_s5 + $0x30] sm:$0xff] }
   0xb   :  { %70 = vmatpush.msra.mxu0 %v45_v3  ;;  %v77_v12 = vld [vmem:[%s374_s3] sm:$0xff]  ;;  %137 = vmatpush.msra.mxu2 %v121_v13  ;;  %v119_v15 = vld [vmem:[%s376_s5 + $0x28] sm:$0xff]  ;;  %v117_v17 = vld [vmem:[%s376_s5 + $0x18] sm:$0xff] }
   0xc   :  { %103 = vmatpush.msra.mxu1 %v82_v5  ;;  %v118_v16 = vld [vmem:[%s376_s5 + $0x20] sm:$0xff]  ;;  %v116_v22 = vld [vmem:[%s376_s5 + $0x10] sm:$0xff]  ;;  %v115_v23 = vld [vmem:[%s376_s5 + $0x8] sm:$0xff] }
   0xd   :  { %71 = vmatpush.msra.mxu0 %v44_v6  ;;  %138 = vmatpush.msra.mxu2 %v120_v14  ;;  %v199_v18 = vld [vmem:[%s373_s2] ss:$0 sm:$0xff] }
   0xe   :  { %192 = vmatmul.msk.f32.vlgmr.msra.gmra.mxu0 %vm52_vm0, %v43_v7  ;;  %104 = vmatpush.msra.mxu1 %v81_v8  ;;  %v114_v24 = vld [vmem:[%s376_s5] sm:$0xff] }
   0xf   :  { %139 = vmatpush.msra.mxu2 %v119_v15  ;;  %v200_v25 = vld [vmem:[%s375_s4] ss:$0 sm:$0xff]  ;;  %s261_s4 = smov [#allocation5]  }
  0x10   :  { %105 = vmatpush.msra.mxu1 %v80_v9  ;;  %v201_v29 = vld [vmem:[%s377_s6] ss:$0 sm:$0xff]  ;;  %s180_s5 = sshll.u32 %s261_s4, 4  ;;  %s181_s5 = int_to_ptr.vmem [resolvable:$true] %s180_s5 }
  0x11   :  { %140 = vmatpush.msra.mxu2 %v118_v16 }
  0x12   :  { %106 = vmatpush.msra.mxu1 %v79_v10 }
  0x13   :  { %141 = vmatpush.msra.mxu2 %v117_v17 }
  0x14   :  { %107 = vmatpush.msra.mxu1 %v78_v11 }
  0x15   :  { %142 = vmatpush.msra.mxu2 %v116_v22 }
  0x16   :  { %108 = vmatpush.msra.mxu1 %v77_v12 }
  0x17   :  { %143 = vmatpush.msra.mxu2 %v115_v23 }
  0x19   :  { %144 = vmatpush.msra.mxu2 %v114_v24 }
  0x8b   :  { %v73_v19 = vpop.f32.mrf.mxu0 }
  0x8c   :  { %v74_v20 = vadd.f32 %v199_v18, %v73_v19 }
  0x8e   :  { %v76_v21 = vmax.f32 %v74_v20, 0.0 }
  0x90   :  { %193 = vmatmul.msk.f32.vlgmr.msra.gmra.mxu1 %vm89_vm1, %v76_v21 }
 0x10d   :  { %v110_v26 = vpop.f32.mrf.mxu1 }
 0x10e   :  { %v111_v27 = vadd.f32 %v200_v25, %v110_v26 }
 0x110   :  { %v113_v28 = vmax.f32 %v111_v27, 0.0 }
 0x112   :  { %194 = vmatmul.msk.f32.vlgmr.msra.gmra.mxu2 %vm89_vm1, %v113_v28 }
 0x195   :  { %v146_v30 = vpop.f32.mrf.mxu2 }
 0x196   :  { %v147_v31 = vadd.f32 %v201_v29, %v146_v30 }
 0x198   :  { %v150_v32 = vsel %vm149_vm2, %v147_v31, -inf }
 0x199   :  { %151 = vmax.xlane.f32.xlu0 %v150_v32 }
 0x20c   :  { %v152_v33 = vpop.xlane.xlu0 %151 }
 0x20d   :  { %v153_v34 = vsub.f32 %v147_v31, %v152_v33 }
 0x20f   :  { %v154_v35 = vmul.f32 1.442695, %v153_v34 }
 0x211   :  { %202 = vpow2.f32 %v154_v35 }
 0x217   :  { %v203_v36 = vpop.eup %202 }
 0x218   :  { %v156_v37 = vsel %vm149_vm2, %v203_v36, 0.0 }
 0x219   :  { %157 = vadd.xlane.f32.xlu0 %v156_v37 }
 0x28c   :  { %v158_v38 = vpop.xlane.xlu0 %157 }
 0x28d   :  { %204 = vrcp.f32 %v158_v38  ;;  %v170_v42 = vand.u32 2147483648, %v158_v38  ;;  %v168_v44 = vand.u32 2147483647, %v158_v38  ;;  %vm164_vm4 = vweird.f32 %v158_v38 }
 0x28f   :  { %v171_v46 = vor.u32 1.1754944e-38, %v170_v42  ;;  %vm169_vm6 = vcmp.eq.f32.partialorder %v168_v44, 8.507059e+37 }
 0x293   :  { %v205_v39 = vpop.eup %204 }
 0x294   :  { %v160_v40 = vmul.f32 %v205_v39, %v158_v38  ;;  %vm165_vm3 = vweird.f32 %v205_v39 }
 0x295   :  { %vm166_vm5 = vmor %vm164_vm4, %vm165_vm3 }
 0x296   :  { %v161_v41 = vsub.f32 1.0, %v160_v40 }
 0x298   :  { %v162_v43 = vmul.f32 %v205_v39, %v161_v41 }
 0x29a   :  { %v163_v45 = vadd.f32 %v205_v39, %v162_v43 }
 0x29c   :  { %v167_v47 = vsel %vm166_vm5, %v205_v39, %v163_v45 }
 0x29d   :  { %v172_v48 = vsel %vm169_vm6, %v171_v46, %v167_v47 }
 0x29e   :  { %v173_v49 = vmul.f32 %v203_v36, %v172_v48 }
 0x2a0   :  { %174 = vst.msk [vmem:[#allocation5] sm:$0xff] %vm149_vm2, %v173_v49 }
 0x2a1   :  { %185 = dma.vmem_to_hbm [thread:$0]  %s181_s5, 128, %s183_s0, [#allocation4]  }
 0x2a2   :  { %256 = dma.done.wait [#allocation4], 128  }
 0x2a3   :  { %257 = vsyncadd [#allocation4], 4294967168 }
 0x2a4   :  { %190 = vsyncpa [#allocation3], 1 }
 0x2a5   :  { %191 = vsyncpa [#allocation4], 1 }

</bundles_post_ra>
